<compile_context>
chip_gen: v6e
topology: v6e:2x2x1
jax: 0.10.0
libtpu: 0.0.40
codegen_flags: <defaults>
</compile_context>

<pallas_src>
import jax
import jax.numpy as jnp
from jax.experimental import pallas as pl
from jax.experimental.pallas import tpu as pltpu


# Column layout of the packed [H, 8] parameter slab.
_W1, _B1, _B2, _W3, _B3 = 0, 1, 2, 3, 4


def mlp_kernel(x_ref, w2_ref, vec_ref, o_ref):
    # x_ref  : [1, TILE_B]  batch slice (batch on lanes)
    # w2_ref : [H, H]       second Linear weight in (out, in) layout
    # vec_ref: [H, 8]       packed columns: w1 | b1 | b2 | w3 | b3 | pad
    # o_ref  : [1, TILE_B]
    x = x_ref[...]                                     # [1, TILE_B]
    w1 = vec_ref[:, _W1:_W1 + 1]                       # [H, 1]
    b1 = vec_ref[:, _B1:_B1 + 1]                       # [H, 1]
    b2 = vec_ref[:, _B2:_B2 + 1]                       # [H, 1]
    w3 = vec_ref[:, _W3:_W3 + 1]                       # [H, 1]
    b3 = vec_ref[0:1, _B3:_B3 + 1]                     # [1, 1]

    # Layer 1: Linear(1, H) is a K=1 contraction -> outer product on the VPU
    # (no MXU round-trip for a 1-deep contraction).
    h = jnp.maximum(w1 * x + b1, 0.0)                  # [H, TILE_B]

    # Layer 2: Linear(H, H) -> the only matmul with MXU merit, f32 accumulate,
    # lane-dense [H, TILE_B] result straight off the MXU.
    h = jnp.dot(w2_ref[...], h, preferred_element_type=jnp.float32) + b2
    h = jnp.maximum(h, 0.0)                            # [H, TILE_B]

    # Layer 3: Linear(H, 1) is an N=1 contraction -> VPU multiply + sublane
    # (XLU) reduce; the result is already a lane-dense [1, TILE_B] row.
    out = jnp.sum(w3 * h, axis=0, keepdims=True) + b3  # [1, TILE_B]
    o_ref[...] = out.astype(o_ref.dtype)


def maml_forward(x, params, *, tile_b=None):
    """Pallas implementation of MAML.forward for 2-D inputs (fc path).

    x: [B, 1] float32. params: (w1t [1,H], b1 [1,H], w2t [H,H], b2 [1,H],
    w3t [H,1], b3 [1,1]) with nn.Linear semantics y = x @ W.T + b (weights
    stored transposed as [in, out]). Returns [B, 1] float32.
    """
    w1t, b1, w2t, b2, w3t, b3 = params
    B, dim_input = x.shape
    hidden = w2t.shape[0]
    out_dim = w3t.shape[1]
    assert dim_input == 1 and out_dim == 1, "fc path of MAML uses dim_input=dim_output=1"

    # ---- tile sizing: one grid step for small batches, 1024-lane tiles for
    # large ones (per-step overhead ~0.35us; VMEM use here is tiny either way).
    if tile_b is None:
        tile_b = min(1024, pl.cdiv(B, 128) * 128)
    n_tiles = pl.cdiv(B, tile_b)
    b_pad = n_tiles * tile_b

    # ---- wrapper-side packing (layout plumbing only) ---------------------
    # Batch goes on the lane axis; pad to a multiple of tile_b lanes.
    x_row = jnp.pad(x.reshape(1, B), ((0, 0), (0, b_pad - B)))           # [1, B_pad]

    w2 = w2t.T                                                           # [H, H] (out, in)
    zeros = jnp.zeros((hidden,), jnp.float32)
    vec_slab = jnp.stack(
        [
            w1t.reshape(hidden),                 # W1 as a column (in = 1)
            b1.reshape(hidden),
            b2.reshape(hidden),
            w3t.reshape(hidden),                 # W3 as a column (out = 1)
            jnp.full((hidden,), b3[0, 0]),
            zeros, zeros, zeros,
        ],
        axis=1,
    ).astype(jnp.float32)                                                # [H, 8]

    out_row = pl.pallas_call(
        mlp_kernel,
        out_shape=jax.ShapeDtypeStruct((1, b_pad), jnp.float32),
        grid=(n_tiles,),
        in_specs=[
            pl.BlockSpec((1, tile_b), lambda i: (0, i)),        # batch slice
            pl.BlockSpec((hidden, hidden), lambda i: (0, 0)),   # resident W2
            pl.BlockSpec((hidden, 8), lambda i: (0, 0)),        # resident vector slab
        ],
        out_specs=pl.BlockSpec((1, tile_b), lambda i: (0, i)),
        compiler_params=pltpu.CompilerParams(
            dimension_semantics=("parallel",)),
    )(x_row, w2, vec_slab)

    return out_row[0, :B].reshape(B, 1)


# --------------------------- init / reference -----------------------------

def init_linear(key, fan_in, fan_out):
    """torch.nn.Linear default init: U(-k, k), k = 1/sqrt(fan_in).
    Returns W transposed to [in, out] plus bias as [1, out]."""
    k = 1.0 / jnp.sqrt(jnp.asarray(fan_in, jnp.float32))
    kw, kb = jax.random.split(key)
    w_t = jax.random.uniform(kw, (fan_in, fan_out), jnp.float32, -k, k)
    b = jax.random.uniform(kb, (1, fan_out), jnp.float32, -k, k)
    return w_t, b


def make_params(key, dim_input=1, dim_hidden=(40, 40), dim_output=1):
    k1, k2, k3 = jax.random.split(key, 3)
    w1t, b1 = init_linear(k1, dim_input, dim_hidden[0])      # feature_extractor[0]
    w2t, b2 = init_linear(k2, dim_hidden[0], dim_hidden[1])  # feature_extractor[2]
    w3t, b3 = init_linear(k3, dim_hidden[1], dim_output)     # classifier
    return (w1t, b1, w2t, b2, w3t, b3)


def reference_forward(x, params):
    w1t, b1, w2t, b2, w3t, b3 = params
    h = jnp.maximum(x * w1t.reshape(1, -1) + b1, 0.0)                     # K=1: exact f32
    h = jnp.maximum(
        jnp.dot(h, w2t, precision=jax.lax.Precision.HIGHEST) + b2, 0.0)
    return jnp.sum(h * w3t.reshape(1, -1), axis=-1, keepdims=True) + b3   # N=1: exact f32


if __name__ == "__main__":
    key = jax.random.PRNGKey(0)
    kp, kx = jax.random.split(key)

    dim_input, dim_output = 1, 1
    params = make_params(kp, dim_input=dim_input, dim_output=dim_output)

    B = 200  # not a multiple of 128 -> exercises lane padding
    x = jax.random.normal(kx, (B, dim_input), jnp.float32)

    fwd = jax.jit(maml_forward)
    out = jax.block_until_ready(fwd(x, params))

    ref = reference_forward(x, params)
    assert out.shape == (B, dim_output)
    assert jnp.allclose(out, ref, atol=1e-5, rtol=1e-5)

    # Also exercise the multi-tile path (2 grid steps) to validate tiling.
    B2 = 1536
    x2 = jax.random.normal(kx, (B2, dim_input), jnp.float32)
    out2 = jax.block_until_ready(jax.jit(maml_forward)(x2, params))
    assert jnp.allclose(out2, reference_forward(x2, params), atol=1e-5, rtol=1e-5)

    print("KERNEL_OK")
</pallas_src>

<mosaic_0001>
module attributes {stable_mosaic.version = 11 : i64} {
  func.func @mlp_kernel(%arg0: i32, %arg1: memref<1x256xf32, #tpu.memory_space<vmem>>, %arg2: memref<40x40xf32, #tpu.memory_space<vmem>>, %arg3: memref<40x8xf32, #tpu.memory_space<vmem>>, %arg4: memref<1x256xf32, #tpu.memory_space<vmem>>) attributes {dimension_semantics = [#tpu.dimension_semantics<parallel>], iteration_bounds = array<i64: 1>, scalar_prefetch = 0 : i64, scratch_operands = 0 : i64, tpu.core_type = #tpu.core_type<tc>, window_params = [{transform_indices = @transform_0, window_bounds = array<i64: 1, 256>}, {pipeline_mode = #tpu.pipeline_mode<synchronous>, transform_indices = @transform_1, window_bounds = array<i64: 40, 40>}, {pipeline_mode = #tpu.pipeline_mode<synchronous>, transform_indices = @transform_2, window_bounds = array<i64: 40, 8>}, {transform_indices = @transform_3, window_bounds = array<i64: 1, 256>}]} {
    %c0 = arith.constant 0 : index
    %c0_0 = arith.constant 0 : index
    %0 = vector.load %arg1[%c0, %c0_0] : memref<1x256xf32, #tpu.memory_space<vmem>>, vector<1x256xf32>
    %c0_1 = arith.constant 0 : index
    %c0_2 = arith.constant 0 : index
    %1 = vector.load %arg3[%c0_1, %c0_2] : memref<40x8xf32, #tpu.memory_space<vmem>>, vector<40x1xf32>
    %c0_3 = arith.constant 0 : index
    %c1 = arith.constant 1 : index
    %2 = vector.load %arg3[%c0_3, %c1] : memref<40x8xf32, #tpu.memory_space<vmem>>, vector<40x1xf32>
    %c0_4 = arith.constant 0 : index
    %c2 = arith.constant 2 : index
    %3 = vector.load %arg3[%c0_4, %c2] : memref<40x8xf32, #tpu.memory_space<vmem>>, vector<40x1xf32>
    %c0_5 = arith.constant 0 : index
    %c3 = arith.constant 3 : index
    %4 = vector.load %arg3[%c0_5, %c3] : memref<40x8xf32, #tpu.memory_space<vmem>>, vector<40x1xf32>
    %c0_6 = arith.constant 0 : index
    %c4 = arith.constant 4 : index
    %5 = vector.load %arg3[%c0_6, %c4] : memref<40x8xf32, #tpu.memory_space<vmem>>, vector<1x1xf32>
    %6 = vector.broadcast %1 : vector<40x1xf32> to vector<40x256xf32>
    %7 = vector.broadcast %0 : vector<1x256xf32> to vector<40x256xf32>
    %8 = arith.mulf %6, %7 : vector<40x256xf32>
    %9 = vector.broadcast %2 : vector<40x1xf32> to vector<40x256xf32>
    %10 = arith.addf %8, %9 : vector<40x256xf32>
    %cst = arith.constant 0.000000e+00 : f32
    %11 = vector.broadcast %cst : f32 to vector<40x256xf32>
    %12 = arith.maximumf %10, %11 : vector<40x256xf32>
    %c0_7 = arith.constant 0 : index
    %c0_8 = arith.constant 0 : index
    %13 = vector.load %arg2[%c0_7, %c0_8] : memref<40x40xf32, #tpu.memory_space<vmem>>, vector<40x40xf32>
    %cst_9 = arith.constant dense<0.000000e+00> : vector<40x256xf32>
    %14 = tpu.matmul %13, %12, %cst_9 {dimension_numbers = #tpu.dot_dimension_numbers<[1], [0], [0], [1], [0, 0, 1, 1], [], []>} : vector<40x40xf32>, vector<40x256xf32>, vector<40x256xf32> -> vector<40x256xf32>
    %15 = vector.broadcast %3 : vector<40x1xf32> to vector<40x256xf32>
    %16 = arith.addf %14, %15 : vector<40x256xf32>
    %cst_10 = arith.constant 0.000000e+00 : f32
    %17 = vector.broadcast %cst_10 : f32 to vector<40x256xf32>
    %18 = arith.maximumf %16, %17 : vector<40x256xf32>
    %19 = vector.broadcast %4 : vector<40x1xf32> to vector<40x256xf32>
    %20 = arith.mulf %19, %18 : vector<40x256xf32>
    %cst_11 = arith.constant dense<0.000000e+00> : vector<256xf32>
    %21 = vector.multi_reduction <add>, %20, %cst_11 [0] : vector<40x256xf32> to vector<256xf32>
    %22 = vector.shape_cast %21 : vector<256xf32> to vector<1x256xf32>
    %23 = vector.broadcast %5 : vector<1x1xf32> to vector<1x256xf32>
    %24 = arith.addf %22, %23 : vector<1x256xf32>
    %c0_12 = arith.constant 0 : index
    %c0_13 = arith.constant 0 : index
    %25 = vector.load %arg4[%c0_12, %c0_13] : memref<1x256xf32, #tpu.memory_space<vmem>>, vector<1x256xf32>
    tpu.vector_store %arg4[%c0_12, %c0_13], %24 {strides = array<i32>} : memref<1x256xf32, #tpu.memory_space<vmem>>, vector<1x256xf32>,
    return
  }
  func.func @transform_0(%arg0: i32) -> (i32, i32) {
    %c0_i32 = arith.constant 0 : i32
    %c0_i32_0 = arith.constant 0 : i32
    return %c0_i32, %arg0 : i32, i32
  }
  func.func @transform_1(%arg0: i32) -> (i32, i32) {
    %c0_i32 = arith.constant 0 : i32
    %c0_i32_0 = arith.constant 0 : i32
    %c0_i32_1 = arith.constant 0 : i32
    return %c0_i32, %c0_i32_0 : i32, i32
  }
  func.func @transform_2(%arg0: i32) -> (i32, i32) {
    %c0_i32 = arith.constant 0 : i32
    %c0_i32_0 = arith.constant 0 : i32
    %c0_i32_1 = arith.constant 0 : i32
    return %c0_i32, %c0_i32_0 : i32, i32
  }
  func.func @transform_3(%arg0: i32) -> (i32, i32) {
    %c0_i32 = arith.constant 0 : i32
    %c0_i32_0 = arith.constant 0 : i32
    return %c0_i32, %arg0 : i32, i32
  }
}

</mosaic_0001>

<bundles_post_ra>
// kernel: maml_forward.1
= control target key start
LH: loop header
LB: loop body
LE: loop exit
PB: predicated region body
PF: predicated region fallthrough
CT: control target
= control target key end

     0   :  { %v372_v0 = vmov 1   ;;  %v373_v1 = vmov 0   ;;  %v374_v7 = vmov 0.0   ;;  %v375_v8 = vmov 2   ;;  %s455_s2 = inlined_call_operand.vmem [shape: f32[40,8], index: 2, kind: input, shape index: {}]   ;;  %s456_s0 = inlined_call_operand.vmem [shape: f32[1,256], index: 0, kind: input, shape index: {}]   ;;  %s457_s1 = inlined_call_operand.vmem [shape: f32[40,40], index: 1, kind: input, shape index: {}]   ;;  %s458_s3 = inlined_call_operand.vmem [shape: f32[1,256], index: 3, kind: output, shape index: {}]  }
   0x1   :  { %360 = vset.pattern.permute.xlu1 %v372_v0  ;;  %359 = vset.pattern.permute.xlu0 %v373_v1  ;;  %v19_v2 = vld [vmem:[%s455_s2 + $0x20] sm:$0xff]  ;;  %v18_v3 = vld [vmem:[%s455_s2 + $0x18] sm:$0xff]  ;;  %v17_v4 = vld [vmem:[%s455_s2 + $0x10] sm:$0xff]  ;;  %v376_v9 = vmov 3   ;;  %v377_v11 = vmov 4   ;;  %v47_v12 = vlaneseq  ;;  %vm132_vm0 = vcmask 326656  }
   0x2   :  { %84 = vperm.xlu1 %360, %v19_v2   ;;  %43 = vperm.xlu0 %359, %v19_v2   ;;  %v16_v5 = vld [vmem:[%s455_s2 + $0x8] sm:$0xff]  ;;  %v15_v6 = vld [vmem:[%s455_s2] sm:$0xff]  ;;  %v110_v60 = vld [vmem:[%s457_s1 + $0x18] sm:$0xff] }
   0x3   :  { %212 = vmatprep.mubr.f32.mxu0 %v374_v7  ;;  %230 = vmatprep.mubr.f32.mxu1 %v374_v7  ;;  %v20_v10 = vld [vmem:[%s455_s2] sm:$0x1]  ;;  %v420_v13 = vshrl.u32 %v47_v12, 7  ;;  %v108_v61 = vld [vmem:[%s457_s1 + $0x8] sm:$0xff]  ;;  %v109_v63 = vld [vmem:[%s457_s1 + $0x10] sm:$0xff]  ;;  %vm330_vm1 = vcmp.lt.s32.totalorder %v47_v12, 256 }
   0x4   :  { %v14_v16 = vld [vmem:[%s456_s0] sm:$0x3] }
   0x5   :  { %v49_v14 = vsub.s32 0, %v420_v13  ;;  %v53_v15 = vsub.s32 1, %v420_v13  ;;  %v107_v59 = vld [vmem:[%s457_s1] sm:$0xff] }
   0x6   :  { %361 = vset.pattern.permute.xlu1 %v373_v1  ;;  %38 = vperm.xlu0 %359, %v18_v3   ;;  %v111_v62 = vld [vmem:[%s457_s1 + $0x20] sm:$0xff] }
   0x7   :  { %33 = vperm.xlu1 %361, %v17_v4   ;;  %v50_v17 = vrot.slane %v14_v16, %v49_v14  ;;  %v54_v18 = vrot.slane %v14_v16, %v53_v15 }
   0xa   :  { %362 = vset.pattern.permute.xlu0 %v372_v0 }
   0xb   :  { %80 = vperm.xlu0 %362, %v18_v3   ;;  %28 = vperm.xlu1 %361, %v16_v5  }
   0xf   :  { %363 = vset.pattern.permute.xlu1 %v372_v0  ;;  %364 = vset.pattern.permute.xlu0 %v373_v1 }
  0x10   :  { %76 = vperm.xlu1 %363, %v17_v4   ;;  %23 = vperm.xlu0 %364, %v15_v6  }
  0x14   :  { %72 = vperm.xlu1 %363, %v16_v5   ;;  %365 = vset.pattern.permute.xlu0 %v375_v8 }
  0x15   :  { %113 = vperm.xlu0 %365, %v15_v6  }
  0x18   :  { %68 = vperm.xlu1 %363, %v15_v6  }
  0x19   :  { %125 = vperm.xlu0 %365, %v18_v3  }
  0x1c   :  { %366 = vset.pattern.permute.xlu1 %v375_v8 }
  0x1d   :  { %117 = vperm.xlu1 %366, %v16_v5   ;;  %368 = vset.pattern.permute.xlu0 %v376_v9 }
  0x1e   :  { %258 = vperm.xlu0 %368, %v16_v5  }
  0x21   :  { %121 = vperm.xlu1 %366, %v17_v4  }
  0x22   :  { %266 = vperm.xlu0 %368, %v18_v3  }
  0x25   :  { %367 = vset.pattern.permute.xlu1 %v376_v9 }
  0x26   :  { %254 = vperm.xlu1 %367, %v15_v6   ;;  %371 = vset.pattern.permute.xlu0 %v377_v11 }
  0x27   :  { %305 = vperm.xlu0 %371, %v20_v10  }
  0x2a   :  { %369 = vset.pattern.permute.xlu1 %v375_v8 }
  0x2b   :  { %129 = vperm.xlu1 %369, %v19_v2  }
  0x2f   :  { %370 = vset.pattern.permute.xlu1 %v376_v9 }
  0x30   :  { %262 = vperm.xlu1 %370, %v17_v4  }
  0x34   :  { %270 = vperm.xlu1 %370, %v19_v2  }
  0x7d   :  { %v85_v19 = vpop.permute.xlu1 %84  ;;  %v44_v20 = vpop.permute.xlu0 %43 }
  0x7e   :  { %v65_v21 = vmul.f32 %v50_v17, %v44_v20  ;;  %v66_v22 = vmul.f32 %v54_v18, %v44_v20 }
  0x80   :  { %v96_v23 = vadd.f32 %v85_v19, %v66_v22  ;;  %v95_v24 = vadd.f32 %v85_v19, %v65_v21 }
  0x81   :  { %v39_v25 = vpop.permute.xlu0 %38 }
  0x82   :  { %v34_v26 = vpop.permute.xlu1 %33  ;;  %v106_v27 = vmax.f32 %v96_v23, 0.0  ;;  %v105_v28 = vmax.f32 %v95_v24, 0.0  ;;  %v63_v29 = vmul.f32 %v50_v17, %v39_v25  ;;  %v64_v30 = vmul.f32 %v54_v18, %v39_v25 }
  0x83   :  { %v61_v37 = vmul.f32 %v50_v17, %v34_v26  ;;  %v62_v38 = vmul.f32 %v54_v18, %v34_v26 }
  0x84   :  { %170 = vmatprep.subr.mxu0 %v106_v27  ;;  %342 = vmatprep.subr.mxu1 %v106_v27 }
  0x85   :  { %171 = vmatpush1.msra.mxu0 %v105_v28  ;;  %347 = vmatpush1.msra.mxu1 %v105_v28 }
  0x86   :  { %v81_v31 = vpop.permute.xlu0 %80  ;;  %v29_v32 = vpop.permute.xlu1 %28 }
  0x87   :  { %v93_v33 = vadd.f32 %v81_v31, %v63_v29  ;;  %v94_v34 = vadd.f32 %v81_v31, %v64_v30  ;;  %v59_v43 = vmul.f32 %v50_v17, %v29_v32  ;;  %v60_v44 = vmul.f32 %v54_v18, %v29_v32 }
  0x89   :  { %v103_v35 = vmax.f32 %v93_v33, 0.0  ;;  %v104_v36 = vmax.f32 %v94_v34, 0.0 }
  0x8b   :  { %v77_v39 = vpop.permute.xlu1 %76  ;;  %172 = vmatprep.subr.mxu0 %v104_v36  ;;  %343 = vmatprep.subr.mxu1 %v104_v36  ;;  %v24_v42 = vpop.permute.xlu0 %23 }
  0x8c   :  { %v91_v40 = vadd.f32 %v77_v39, %v61_v37  ;;  %v92_v41 = vadd.f32 %v77_v39, %v62_v38  ;;  %173 = vmatpush1.msra.mxu0 %v103_v35  ;;  %348 = vmatpush1.msra.mxu1 %v103_v35  ;;  %v57_v48 = vmul.f32 %v50_v17, %v24_v42 }
  0x8d   :  { %v58_v51 = vmul.f32 %v54_v18, %v24_v42 }
  0x8e   :  { %v101_v45 = vmax.f32 %v91_v40, 0.0  ;;  %v102_v46 = vmax.f32 %v92_v41, 0.0 }
  0x8f   :  { %v73_v47 = vpop.permute.xlu1 %72 }
  0x90   :  { %v89_v49 = vadd.f32 %v73_v47, %v59_v43  ;;  %v90_v50 = vadd.f32 %v73_v47, %v60_v44  ;;  %174 = vmatprep.subr.mxu0 %v102_v46  ;;  %344 = vmatprep.subr.mxu1 %v102_v46  ;;  %v114_v2 = vpop.permute.xlu0 %113 }
  0x91   :  { %175 = vmatpush1.msra.mxu0 %v101_v45  ;;  %349 = vmatpush1.msra.mxu1 %v101_v45 }
  0x92   :  { %v99_v52 = vmax.f32 %v89_v49, 0.0  ;;  %v100_v53 = vmax.f32 %v90_v50, 0.0 }
  0x93   :  { %v69_v54 = vpop.permute.xlu1 %68 }
  0x94   :  { %v87_v55 = vadd.f32 %v69_v54, %v57_v48  ;;  %v88_v56 = vadd.f32 %v69_v54, %v58_v51  ;;  %176 = vmatprep.subr.mxu0 %v100_v53  ;;  %345 = vmatprep.subr.mxu1 %v100_v53  ;;  %v126_v4 = vpop.permute.xlu0 %125 }
  0x95   :  { %177 = vmatpush1.msra.mxu0 %v99_v52  ;;  %350 = vmatpush1.msra.mxu1 %v99_v52 }
  0x96   :  { %v97_v57 = vmax.f32 %v87_v55, 0.0  ;;  %v98_v58 = vmax.f32 %v88_v56, 0.0 }
  0x98   :  { %178 = vmatprep.subr.mxu0 %v98_v58  ;;  %346 = vmatprep.subr.mxu1 %v98_v58  ;;  %v118_v0 = vpop.permute.xlu1 %117 }
  0x99   :  { %179 = vmatpush1.msra.mxu0 %v97_v57  ;;  %351 = vmatpush1.msra.mxu1 %v97_v57  ;;  %v259_v16 = vpop.permute.xlu0 %258 }
  0x9a   :  { %337 = vmatmul.mubr.msk.f32.vlgmr.msra.gmra.mxu0 %vm132_vm0, %v107_v59  ;;  %340 = vmatmul.mubr.msk.f32.vlgmr.msra.gmra.mxu1 %vm132_vm0, %v110_v60 }
  0x9b   :  { %218 = vmatprep.mubr.f32.mxu0 %v374_v7  ;;  %236 = vmatprep.mubr.f32.mxu1 %v374_v7 }
  0x9c   :  { %v122_v1 = vpop.permute.xlu1 %121 }
  0x9d   :  { %v267_v36 = vpop.permute.xlu0 %266 }
  0x9e   :  { %338 = vmatmul.mubr.msk.f32.gmra.mxu0 %vm132_vm0, %v108_v61  ;;  %341 = vmatmul.mubr.msk.f32.gmra.mxu1 %vm132_vm0, %v111_v62 }
  0x9f   :  { %224 = vmatprep.mubr.f32.mxu0 %v374_v7 }
  0xa1   :  { %v255_v3 = vpop.permute.xlu1 %254 }
  0xa2   :  { %339 = vmatmul.mubr.msk.f32.gmra.mxu0 %vm132_vm0, %v109_v63 }
  0xa6   :  { %v130_v8 = vpop.permute.xlu1 %129 }
  0xab   :  { %v263_v23 = vpop.permute.xlu1 %262 }
  0xaf   :  { %v271_v47 = vpop.permute.xlu1 %270 }
 0x15a   :  { %v214_v5 = vpop.f32.mrf.mxu0  ;;  %v232_v6 = vpop.f32.mrf.mxu1 }
 0x15b   :  { %v215_v9 = vadd.f32 %v214_v5, %v114_v2  ;;  %v233_v19 = vadd.f32 %v232_v6, %v126_v4 }
 0x15c   :  { %v216_v10 = vpop.f32.mrf.mxu0  ;;  %v234_v11 = vpop.f32.mrf.mxu1 }
 0x15d   :  { %v217_v14 = vadd.f32 %v216_v10, %v114_v2  ;;  %v243_v18 = vmax.f32 %v215_v9, 0.0  ;;  %v235_v25 = vadd.f32 %v234_v11, %v126_v4  ;;  %v249_v33 = vmax.f32 %v233_v19, 0.0  ;;  %v306_v11 = vpop.permute.xlu0 %305 }
 0x15e   :  { %v220_v15 = vpop.f32.mrf.mxu0  ;;  %v238_v7 = vpop.f32.mrf.mxu1 }
 0x15f   :  { %v221_v17 = vadd.f32 %v220_v15, %v118_v0  ;;  %v244_v24 = vmax.f32 %v217_v14, 0.0  ;;  %v239_v30 = vadd.f32 %v238_v7, %v130_v8  ;;  %v273_v32 = vmul.f32 %v255_v3, %v243_v18 }
 0x160   :  { %v222_v20 = vpop.f32.mrf.mxu0  ;;  %v240_v27 = vpop.f32.mrf.mxu1  ;;  %v250_v41 = vmax.f32 %v235_v25, 0.0  ;;  %v279_v46 = vmul.f32 %v267_v36, %v249_v33 }
 0x161   :  { %v245_v21 = vmax.f32 %v221_v17, 0.0  ;;  %v223_v22 = vadd.f32 %v222_v20, %v118_v0  ;;  %v241_v38 = vadd.f32 %v240_v27, %v130_v8  ;;  %v274_v40 = vmul.f32 %v255_v3, %v244_v24 }
 0x162   :  { %v226_v26 = vpop.f32.mrf.mxu0  ;;  %v251_v43 = vmax.f32 %v239_v30, 0.0  ;;  %v280_v52 = vmul.f32 %v267_v36, %v250_v41 }
 0x163   :  { %v275_v28 = vmul.f32 %v259_v16, %v245_v21  ;;  %v246_v29 = vmax.f32 %v223_v22, 0.0  ;;  %v227_v31 = vadd.f32 %v226_v26, %v122_v1  ;;  %v252_v50 = vmax.f32 %v241_v38, 0.0 }
 0x164   :  { %v228_v34 = vpop.f32.mrf.mxu0  ;;  %v281_v54 = vmul.f32 %v271_v47, %v251_v43 }
 0x165   :  { %v276_v35 = vmul.f32 %v259_v16, %v246_v29  ;;  %v247_v37 = vmax.f32 %v227_v31, 0.0  ;;  %v229_v39 = vadd.f32 %v228_v34, %v122_v1  ;;  %v283_v42 = vadd.f32 %v275_v28, %v273_v32 }
 0x166   :  { %v282_v56 = vmul.f32 %v271_v47, %v252_v50  ;;  %v378_v1 = vmov 1966171168  }
 0x167   :  { %v277_v44 = vmul.f32 %v263_v23, %v247_v37  ;;  %v248_v45 = vmax.f32 %v229_v39, 0.0  ;;  %v293_v48 = vadd.f32 %v276_v35, %v274_v40  ;;  %v314_v2 = vunpack.c.l.s4 %v378_v1 }
 0x169   :  { %v284_v49 = vadd.f32 %v283_v42, %v277_v44  ;;  %v278_v51 = vmul.f32 %v263_v23, %v248_v45  ;;  %v315_v8 = vunpack.c.0.s8 %v314_v2 }
 0x16b   :  { %v294_v53 = vadd.f32 %v293_v48, %v278_v51  ;;  %v285_v55 = vadd.f32 %v284_v49, %v279_v46  ;;  %v318_v15 = vsub.s32 %v315_v8, %v420_v13 }
 0x16d   :  { %v286_v57 = vadd.f32 %v285_v55, %v281_v54  ;;  %v295_v58 = vadd.f32 %v294_v53, %v280_v52 }
 0x16f   :  { %v287_v59 = vrot.slane %v286_v57, 4  ;;  %v296_v60 = vadd.f32 %v295_v58, %v282_v56 }
 0x171   :  { %v288_v61 = vadd.f32 %v287_v59, %v286_v57  ;;  %v297_v62 = vrot.slane %v296_v60, 4 }
 0x173   :  { %v298_v63 = vadd.f32 %v297_v62, %v296_v60  ;;  %v289_v0 = vrot.slane %v288_v61, 2 }
 0x175   :  { %v290_v3 = vadd.f32 %v289_v0, %v288_v61  ;;  %v299_v4 = vrot.slane %v298_v63, 2 }
 0x177   :  { %v291_v5 = vrot.slane %v290_v3, 1  ;;  %v300_v6 = vadd.f32 %v299_v4, %v298_v63 }
 0x179   :  { %v292_v9 = vadd.f32 %v291_v5, %v290_v3  ;;  %v301_v10 = vrot.slane %v300_v6, 1 }
 0x17b   :  { %v302_v14 = vadd.f32 %v301_v10, %v300_v6  ;;  %v308_v7 = vadd.f32 %v306_v11, %v292_v9 }
 0x17d   :  { %v309_v16 = vadd.f32 %v306_v11, %v302_v14 }
 0x17f   :  { %v312_v17 = vcombine.low %v308_v7, %v309_v16 }
 0x181   :  { %v319_v18 = vrot.slane %v312_v17, %v318_v15 }
 0x183   :  { %v326_v19 = vrot.slane %v319_v18, %v318_v15 }
 0x185   :  { %332 = vst.msk [vmem:[%s458_s3] sm:$0x3] %vm330_vm1, %v326_v19 }

</bundles_post_ra>
